<compile_context>
chip_gen: v6e
topology: v6e:2x2x1
jax: 0.10.0
libtpu: 0.0.40
codegen_flags: <defaults>
</compile_context>

<pallas_src>
import functools
import math

import jax
import jax.numpy as jnp
from jax.experimental import pallas as pl
from jax.experimental.pallas import tpu as pltpu

_SQRT_2_OVER_PI = math.sqrt(2.0 / math.pi)
_GELU_K = _SQRT_2_OVER_PI * 0.044715

# Never shrink tiles below ~2 MiB just to get more grid steps.
_MIN_BLOCK_BYTES = 2 << 20
# Below this many bytes the fixed pallas_call overhead dominates; use jnp.
_PALLAS_MIN_BYTES = 4 * 1024


def _gelu_kernel(x_ref, o_ref):
    # Upcast to f32 for the math inside VMEM, store back in the native dtype
    # (halves HBM traffic for bf16/fp16 inputs). Out-of-bounds rows of a
    # partial last block are read and fed to tanh (garbage-in, masked-out on
    # the store) -- harmless on TPU.
    x = x_ref[...].astype(jnp.float32)
    c = jnp.float32(_SQRT_2_OVER_PI)
    k = jnp.float32(_GELU_K)
    inner = x * (c + k * (x * x))          # = c*x + c*0.044715*x^3
    t = jnp.tanh(inner)                    # EUP slot, stays off the VPU
    y = x * (jnp.float32(0.5) + jnp.float32(0.5) * t)
    o_ref[...] = y.astype(o_ref.dtype)


@functools.lru_cache(maxsize=None)
def _chip_config():
    """Per-generation block size / grid-depth / VMEM-limit choices."""
    try:
        kind = jax.devices()[0].device_kind.lower()
    except Exception:  # pragma: no cover - e.g. no devices during tracing
        kind = ""
    if "v7" in kind:
        # Dual TC, 3.2 TB/s HBM, 64 MiB physical VMEM (32 MiB scoped default).
        return {"block_bytes": 8 << 20, "min_grid_steps": 4,
                "vmem_limit_bytes": 48 << 20}
    if "v6" in kind or "trillium" in kind:
        # 4 MiB blocks: 4 double-buffered slots = 16 MiB < 32 MiB default.
        return {"block_bytes": 4 << 20, "min_grid_steps": 2,
                "vmem_limit_bytes": None}
    if "v5" in kind:
        # v5e scoped VMEM default is 16 MiB: keep blocks at 2 MiB.
        return {"block_bytes": 2 << 20, "min_grid_steps": 2,
                "vmem_limit_bytes": None}
    # Unknown chip: conservative defaults.
    return {"block_bytes": 2 << 20, "min_grid_steps": 2,
            "vmem_limit_bytes": None}


def _gelu_2d(x2d: jax.Array, *, block_bytes: int | None = None,
             min_grid_steps: int | None = None) -> jax.Array:
    """Run the GELU kernel over a (rows, lanes) slab; lanes % 128 == 0."""
    cfg = _chip_config()
    if block_bytes is None:
        block_bytes = cfg["block_bytes"]
    if min_grid_steps is None:
        min_grid_steps = cfg["min_grid_steps"]

    rows, lanes = x2d.shape
    itemsize = jnp.dtype(x2d.dtype).itemsize
    # Dtype-native sublane multiple: 8 (f32), 16 (bf16/fp16), 32 (int8/fp8),
    # so packed dtypes keep full sublanes / unmasked stores at block edges.
    sub = max(8, 32 // itemsize)
    row_bytes = lanes * itemsize

    target_rows = max(sub, (block_bytes // row_bytes) // sub * sub)
    if rows <= target_rows:
        # Single block covering the full array (full-extent dims are exempt
        # from the (8,128) divisibility rule).
        tile_rows = rows
    else:
        tile_rows = target_rows
        # On v7x make sure both TensorCores get work (>= min_grid_steps grid
        # steps), but never shrink the tile below the ~2 MiB floor.
        if pl.cdiv(rows, tile_rows) < min_grid_steps:
            floor_rows = max(sub, (_MIN_BLOCK_BYTES // row_bytes) // sub * sub)
            want_rows = max(sub, (rows // min_grid_steps) // sub * sub)
            tile_rows = min(tile_rows, max(floor_rows, want_rows))

    grid = (pl.cdiv(rows, tile_rows),)

    n = rows * lanes
    cost = pl.CostEstimate(flops=7 * n, transcendentals=n,
                           bytes_accessed=2 * n * itemsize)

    return pl.pallas_call(
        _gelu_kernel,
        out_shape=jax.ShapeDtypeStruct((rows, lanes), x2d.dtype),
        grid_spec=pltpu.PrefetchScalarGridSpec(
            num_scalar_prefetch=0,
            grid=grid,
            in_specs=[pl.BlockSpec((tile_rows, lanes), lambda i: (i, 0))],
            out_specs=pl.BlockSpec((tile_rows, lanes), lambda i: (i, 0)),
        ),
        compiler_params=pltpu.CompilerParams(
            dimension_semantics=("parallel",),
            vmem_limit_bytes=cfg["vmem_limit_bytes"],
        ),
        cost_estimate=cost,
    )(x2d)


def _gelu_jnp(x: jax.Array) -> jax.Array:
    """Plain-jnp path for tiny inputs / sub-128-element tails."""
    xf = x.astype(jnp.float32)
    y = 0.5 * xf * (1.0 + jnp.tanh(_SQRT_2_OVER_PI * (xf + 0.044715 * xf ** 3)))
    return y.astype(x.dtype)


def gelu_pallas(x: jax.Array) -> jax.Array:
    """Tanh-approximation GELU matching the reference CUDA kernel."""
    orig_shape = x.shape
    n = x.size
    if n == 0:
        return x
    itemsize = jnp.dtype(x.dtype).itemsize

    # Tiny inputs: pallas_call fixed overhead dwarfs the HBM time.
    if n * itemsize < _PALLAS_MIN_BYTES:
        return _gelu_jnp(x)

    # Fast path: pick the widest lane-dense column count that divides numel;
    # lane-dense (>=128) output slabs get unmasked vst stores.
    for cand in (1024, 512, 256, 128):
        if n % cand == 0:
            out2d = _gelu_2d(x.reshape(n // cand, cand))
            return out2d.reshape(orig_shape)

    # Rare fallback: numel not a multiple of 128. Run the 128-aligned prefix
    # through the fast path and the <128-element tail through plain jnp
    # (no full-array pad + slice round trips).
    flat = x.reshape(-1)
    n_main = (n // 128) * 128
    lanes = 128
    for cand in (1024, 512, 256):
        if n_main % cand == 0:
            lanes = cand
            break
    head_out = _gelu_2d(flat[:n_main].reshape(n_main // lanes, lanes)).reshape(-1)
    tail_out = _gelu_jnp(flat[n_main:])
    return jnp.concatenate([head_out, tail_out]).reshape(orig_shape)


def _gelu_ref(x):
    xf = x.astype(jnp.float32)
    c = math.sqrt(2.0 / math.pi)
    y = 0.5 * xf * (1.0 + jnp.tanh(c * (xf + 0.044715 * xf ** 3)))
    return y.astype(x.dtype)


if __name__ == "__main__":
    key = jax.random.PRNGKey(0)
    k0, k1, k2, k3 = jax.random.split(key, 4)

    # Primary shape implied by the module's usage (NCHW, small). 8 KiB -> uses
    # the Pallas single-block path.
    x = jax.random.normal(k0, (2, 4, 16, 16), dtype=jnp.float32)
    y = jax.block_until_ready(gelu_pallas(x))
    assert y.shape == x.shape and y.dtype == x.dtype
    assert jnp.max(jnp.abs(y - _gelu_ref(x))) < 1e-5

    # Fallback path: numel not a multiple of 128 (prefix via kernel, tail jnp).
    x_odd = jax.random.normal(k1, (3, 5, 7, 11), dtype=jnp.float32)
    y_odd = jax.block_until_ready(gelu_pallas(x_odd))
    assert y_odd.shape == x_odd.shape
    assert jnp.max(jnp.abs(y_odd - _gelu_ref(x_odd))) < 1e-5

    # Multi-step grid with a partial last block (small block_bytes to force it).
    x2d = jax.random.normal(k2, (100, 128), dtype=jnp.float32)
    y2d = jax.block_until_ready(_gelu_2d(x2d, block_bytes=8 * 128 * 4))
    assert jnp.max(jnp.abs(y2d - _gelu_ref(x2d))) < 1e-5

    # Mid-size tensor exercising the default generation-aware tiling.
    x_mid = jax.random.normal(k3, (2048, 1024), dtype=jnp.float32)
    y_mid = jax.block_until_ready(gelu_pallas(x_mid))
    assert jnp.max(jnp.abs(y_mid - _gelu_ref(x_mid))) < 1e-5

    # Native bf16 path (no wrapper-side casts; f32 math only inside the kernel,
    # dtype-aware sublane rounding = 16).
    x_bf = x_mid.astype(jnp.bfloat16)
    y_bf = jax.block_until_ready(gelu_pallas(x_bf))
    assert y_bf.dtype == jnp.bfloat16
    assert jnp.max(jnp.abs(y_bf.astype(jnp.float32)
                           - _gelu_ref(x_bf).astype(jnp.float32))) < 2e-2

    print("KERNEL_OK")
</pallas_src>

<mosaic_0001>
module attributes {stable_mosaic.version = 11 : i64} {
  func.func @_gelu_kernel(%arg0: i32, %arg1: memref<2x1024xf32, #tpu.memory_space<vmem>>, %arg2: memref<2x1024xf32, #tpu.memory_space<vmem>>) attributes {dimension_semantics = [#tpu.dimension_semantics<parallel>], iteration_bounds = array<i64: 1>, scalar_prefetch = 0 : i64, scratch_operands = 0 : i64, tpu.core_type = #tpu.core_type<tc>, window_params = [{transform_indices = @transform_0, window_bounds = array<i64: 2, 1024>}, {transform_indices = @transform_1, window_bounds = array<i64: 2, 1024>}]} {
    %c0 = arith.constant 0 : index
    %c0_0 = arith.constant 0 : index
    %0 = vector.load %arg1[%c0, %c0_0] : memref<2x1024xf32, #tpu.memory_space<vmem>>, vector<2x1024xf32>
    %1 = arith.mulf %0, %0 : vector<2x1024xf32>
    %cst = arith.constant 0.0356774069 : f32
    %2 = vector.broadcast %cst : f32 to vector<2x1024xf32>
    %3 = arith.mulf %2, %1 : vector<2x1024xf32>
    %cst_1 = arith.constant 0.797884583 : f32
    %4 = vector.broadcast %cst_1 : f32 to vector<2x1024xf32>
    %5 = arith.addf %4, %3 : vector<2x1024xf32>
    %6 = arith.mulf %0, %5 : vector<2x1024xf32>
    %7 = math.tanh %6 : vector<2x1024xf32>
    %cst_2 = arith.constant 5.000000e-01 : f32
    %8 = vector.broadcast %cst_2 : f32 to vector<2x1024xf32>
    %9 = arith.mulf %8, %7 : vector<2x1024xf32>
    %cst_3 = arith.constant 5.000000e-01 : f32
    %10 = vector.broadcast %cst_3 : f32 to vector<2x1024xf32>
    %11 = arith.addf %10, %9 : vector<2x1024xf32>
    %12 = arith.mulf %0, %11 : vector<2x1024xf32>
    %c0_4 = arith.constant 0 : index
    %c0_5 = arith.constant 0 : index
    %13 = vector.load %arg2[%c0_4, %c0_5] : memref<2x1024xf32, #tpu.memory_space<vmem>>, vector<2x1024xf32>
    tpu.vector_store %arg2[%c0_4, %c0_5], %12 {strides = array<i32>} : memref<2x1024xf32, #tpu.memory_space<vmem>>, vector<2x1024xf32>,
    return
  }
  func.func @transform_0(%arg0: i32) -> (i32, i32) {
    %c0_i32 = arith.constant 0 : i32
    %c0_i32_0 = arith.constant 0 : i32
    return %arg0, %c0_i32 : i32, i32
  }
  func.func @transform_1(%arg0: i32) -> (i32, i32) {
    %c0_i32 = arith.constant 0 : i32
    %c0_i32_0 = arith.constant 0 : i32
    return %arg0, %c0_i32 : i32, i32
  }
}

</mosaic_0001>

<bundles_post_ra>
// kernel: tpu_custom_call.1
= control target key start
LH: loop header
LB: loop body
LE: loop exit
PB: predicated region body
PF: predicated region fallthrough
CT: control target
= control target key end

     0   :  { %6 = vsyncpa [#allocation3], 0  ;;  %s124_s0 = inlined_call_operand.hbm [shape: f32[2,1024], index: 0, kind: input, shape index: {}]   ;;  %s125_s1 = inlined_call_operand.hbm [shape: f32[2,1024], index: 1, kind: output, shape index: {}]  }
   0x1   :  { %7 = vsyncpa [#allocation4], 0  ;;  %s106_s6 = smov [#allocation2]  }
   0x2   :  { %s14_s7 = sshll.u32 %s106_s6, 4  ;;  %s15_s7 = int_to_ptr.vmem [resolvable:$true] %s14_s7 }
   0x3   :  { %s70_s8 = scalar_lea.vmem %s15_s7, 256  ;;  %p75_p1 = scmp.lt.s32.totalorder %s15_s7, %s15_s7 }
   0x4   :  { %p71_p0 = scmp.ne.s32.totalorder %s15_s7, %s70_s8  ;;  %p76_p2 = scmp.lt.s32.totalorder %s70_s8, %s70_s8 }
   0x6   :  { %p77_p3 = por %p76_p2, %p75_p1 }
   0x8   :  { %p78_p4 = pnand %p77_p3, %p71_p0 }
   0xa   :  { %81 = shalt.err (!%p78_p4)
}
   0xb   :  { %17 = dma.hbm_to_vmem [thread:$0]  %s124_s0, 256, %s15_s7, [#allocation3]  }
   0xc   :  { %102 = dma.done.wait [#allocation3], 256  }
   0xd   :  { %103 = vsyncadd [#allocation3], 4294967040  ;;  %v21_v0 = vld [vmem:[#allocation2] sm:$0xff]  ;;  %v22_v1 = vld [vmem:[#allocation2 + $0x8] sm:$0xff]  ;;  %s107_s0 = smov [#allocation5]  }
   0xe   :  { %v23_v2 = vmul.f32 %v21_v0, %v21_v0  ;;  %v24_v3 = vmul.f32 %v22_v1, %v22_v1  ;;  %s47_s11 = sshll.u32 %s107_s0, 4  ;;  %s48_s11 = int_to_ptr.vmem [resolvable:$true] %s47_s11 }
   0xf   :  { %s82_s12 = scalar_lea.vmem %s48_s11, 256  ;;  %p87_p6 = scmp.lt.s32.totalorder %s48_s11, %s48_s11 }
  0x10   :  { %v25_v4 = vmul.f32 0.035677407, %v23_v2  ;;  %v26_v5 = vmul.f32 0.035677407, %v24_v3  ;;  %p83_p5 = scmp.ne.s32.totalorder %s48_s11, %s82_s12  ;;  %p88_p7 = scmp.lt.s32.totalorder %s82_s12, %s82_s12 }
  0x12   :  { %v27_v6 = vadd.f32 0.7978846, %v25_v4  ;;  %v28_v7 = vadd.f32 0.7978846, %v26_v5  ;;  %p89_p8 = por %p88_p7, %p87_p6 }
  0x14   :  { %v29_v8 = vmul.f32 %v27_v6, %v21_v0  ;;  %v30_v9 = vmul.f32 %v28_v7, %v22_v1  ;;  %p90_p9 = pnand %p89_p8, %p83_p5 }
  0x16   :  { %58 = vtanh.f32 %v29_v8 }
  0x17   :  { %60 = vtanh.f32 %v30_v9 }
  0x23   :  { %v59_v10 = vpop.eup %58 }
  0x24   :  { %v61_v11 = vpop.eup %60  ;;  %v33_v12 = vmul.f32 0.5, %v59_v10 }
  0x25   :  { %v34_v13 = vmul.f32 0.5, %v61_v11 }
  0x26   :  { %v35_v14 = vadd.f32 0.5, %v33_v12 }
  0x27   :  { %v36_v15 = vadd.f32 0.5, %v34_v13 }
  0x28   :  { %v37_v16 = vmul.f32 %v35_v14, %v21_v0 }
  0x29   :  { %v38_v17 = vmul.f32 %v36_v15, %v22_v1 }
  0x2a   :  { %39 = vst [vmem:[#allocation5] sm:$0xff] %v37_v16 }
  0x2b   :  { %40 = vst [vmem:[#allocation5 + $0x8] sm:$0xff] %v38_v17 }
  0x2c   :  { %93 = shalt.err (!%p90_p9)
}
  0x2d   :  { %50 = dma.vmem_to_hbm [thread:$0]  %s48_s11, 256, %s125_s1, [#allocation4]  }
  0x2e   :  { %104 = dma.done.wait [#allocation4], 256  }
  0x2f   :  { %105 = vsyncadd [#allocation4], 4294967040 }
  0x30   :  { %54 = vsyncpa [#allocation3], 1 }
  0x31   :  { %55 = vsyncpa [#allocation4], 1 }

</bundles_post_ra>
